<compile_context>
chip_gen: v7x
topology: tpu7x:2x2x1
jax: 0.10.0
libtpu: 0.0.40
codegen_flags: <defaults>
</compile_context>

<pallas_src>
import functools

import jax
import jax.numpy as jnp
from jax.experimental import pallas as pl
from jax.experimental.pallas import tpu as pltpu

# Same order as the PyTorch ModuleList comprehension.
DIRECTIONS = tuple((i, j) for i in range(3) for j in range(3) if (i, j) != (1, 1))

_VMEM_LIMIT_BYTES = 32 * 1024 * 1024  # within scoped/physical VMEM on v5e/v6e/v7x


# --------------------------------------------------------------------------
# Kernels
# --------------------------------------------------------------------------
def _neighbor_kernel_tiled(x_ref, top_ref, bot_ref, o_ref):
    """2-D layout: x_ref (1,C,TH,W); top/bot halo rows (1,C,1,W); o_ref (1,8C,TH,W)."""
    x = x_ref[0]          # (C, TH, W)
    top = top_ref[0]      # (C, 1, W)  row clamp(tile_start - 1)
    bot = bot_ref[0]      # (C, 1, W)  row clamp(tile_end)
    C, TH, W = x.shape

    row = jax.lax.broadcasted_iota(jnp.int32, (1, TH, 1), 1)
    col = jax.lax.broadcasted_iota(jnp.int32, (1, 1, W), 2)

    # Hoisted vertical neighbors (reused by 3 directions each).
    x_up = jnp.where(row == 0, top, pltpu.roll(x, shift=1, axis=1))
    x_dn = jnp.where(row == TH - 1, bot, pltpu.roll(x, shift=TH - 1, axis=1))
    bases = (x_up, x, x_dn)   # indexed by m

    def col_shift(b, n):
        if n == 1:
            return b
        if n == 0:   # neighbor at clamp(col - 1); at col 0 the clamp gives b itself
            return jnp.where(col == 0, b, pltpu.roll(b, shift=1, axis=2))
        return jnp.where(col == W - 1, b, pltpu.roll(b, shift=W - 1, axis=2))

    for d, (m, n) in enumerate(DIRECTIONS):
        nb = col_shift(bases[m], n)
        o_ref[0, d * C:(d + 1) * C] = jnp.abs(x - nb).astype(o_ref.dtype)


def _neighbor_kernel_flat(w, x_ref, o_ref):
    """Lane-dense layout for narrow images: x_ref (1,C,H*W); o_ref (1,8C,H*W)."""
    x = x_ref[0]                     # (C, H*W) -- whole image, no halos needed
    C, HW = x.shape
    lane = jax.lax.broadcasted_iota(jnp.int32, (1, HW), 1)
    col = lane % w

    # Replicate clamp at the image edge == the element itself -> fix value is x/b.
    x_up = jnp.where(lane < w, x, pltpu.roll(x, shift=w, axis=1))
    x_dn = jnp.where(lane >= HW - w, x, pltpu.roll(x, shift=HW - w, axis=1))
    bases = (x_up, x, x_dn)

    def col_shift(b, n):
        if n == 1:
            return b
        if n == 0:
            return jnp.where(col == 0, b, pltpu.roll(b, shift=1, axis=1))
        return jnp.where(col == w - 1, b, pltpu.roll(b, shift=HW - 1, axis=1))

    for d, (m, n) in enumerate(DIRECTIONS):
        nb = col_shift(bases[m], n)
        o_ref[0, d * C:(d + 1) * C] = jnp.abs(x - nb).astype(o_ref.dtype)


# --------------------------------------------------------------------------
# Wrappers
# --------------------------------------------------------------------------
def _choose_tile_h(H, C, W, itemsize, budget):
    # Double-buffered working set per grid step:
    #   2 * (C [in] + 8C [out]) * TH * W * itemsize   (+ two 1-row halos, negligible)
    per_row = 2 * 9 * C * W * itemsize
    cap = max(8, budget // per_row)
    if H <= cap:
        return H
    th = (min(cap, H) // 8) * 8
    while th >= 8:
        if H % th == 0:
            return th
        th -= 8
    return H  # no aligned divisor found; fall back to whole-H blocks


def _call_flat(x, out_dtype, cost, vmem_limit_bytes):
    N, C, H, W = x.shape
    HW = H * W
    xf = x.reshape(N, C, HW)
    out = pl.pallas_call(
        functools.partial(_neighbor_kernel_flat, W),
        out_shape=jax.ShapeDtypeStruct((N, 8 * C, HW), out_dtype),
        grid_spec=pltpu.PrefetchScalarGridSpec(
            num_scalar_prefetch=0,
            grid=(N,),
            in_specs=[pl.BlockSpec((1, C, HW), lambda b: (b, 0, 0))],
            out_specs=pl.BlockSpec((1, 8 * C, HW), lambda b: (b, 0, 0)),
        ),
        compiler_params=pltpu.CompilerParams(
            dimension_semantics=("parallel",),
            vmem_limit_bytes=vmem_limit_bytes),
        cost_estimate=cost,
    )(xf)
    return out.reshape(N, 8 * C, H, W)


def _call_tiled(x, out_dtype, cost, vmem_limit_bytes, tile_h, budget):
    N, C, H, W = x.shape
    itemsize = max(x.dtype.itemsize, jnp.dtype(out_dtype).itemsize)
    TH = _choose_tile_h(H, C, W, itemsize, budget) if tile_h is None else int(tile_h)
    if H % TH != 0:
        raise ValueError(f"tile_h={TH} must divide H={H}")
    nh = H // TH

    def center_map(b, h):
        return (b, 0, h, 0)

    def top_map(b, h):   # 1-row halo above, clamped (replicate at the top edge)
        return (b, 0, jnp.maximum(h * TH - 1, 0), 0)

    def bot_map(b, h):   # 1-row halo below, clamped (replicate at the bottom edge)
        return (b, 0, jnp.minimum((h + 1) * TH, H - 1), 0)

    return pl.pallas_call(
        _neighbor_kernel_tiled,
        out_shape=jax.ShapeDtypeStruct((N, 8 * C, H, W), out_dtype),
        grid_spec=pltpu.PrefetchScalarGridSpec(
            num_scalar_prefetch=0,
            grid=(N, nh),
            in_specs=[
                pl.BlockSpec((1, C, TH, W), center_map),
                pl.BlockSpec((1, C, 1, W), top_map),
                pl.BlockSpec((1, C, 1, W), bot_map),
            ],
            out_specs=pl.BlockSpec((1, 8 * C, TH, W), center_map),
        ),
        compiler_params=pltpu.CompilerParams(
            dimension_semantics=("parallel", "parallel"),
            vmem_limit_bytes=vmem_limit_bytes),
        cost_estimate=cost,
    )(x, x, x)


def neighbor_distancer(x, *, tile_h=None, flatten=None, out_dtype=None,
                       vmem_limit_bytes=_VMEM_LIMIT_BYTES):
    """Pallas implementation of NeighborDistancer.forward. x: (N, C, H, W)."""
    N, C, H, W = x.shape
    out_dtype = x.dtype if out_dtype is None else jnp.dtype(out_dtype)
    itemsize = max(x.dtype.itemsize, jnp.dtype(out_dtype).itemsize)
    cost = pl.CostEstimate(
        flops=16 * N * C * H * W,
        transcendentals=0,
        bytes_accessed=N * C * H * W * (x.dtype.itemsize + 8 * jnp.dtype(out_dtype).itemsize),
    )
    budget = max(vmem_limit_bytes // 3, 2 * 1024 * 1024)

    if flatten is None:
        # Narrow images: flatten (H, W) onto lanes so stores are lane-dense.
        flatten = (W < 128) and (2 * 9 * C * H * W * itemsize <= budget)

    if flatten:
        return _call_flat(x, out_dtype, cost, vmem_limit_bytes)
    return _call_tiled(x, out_dtype, cost, vmem_limit_bytes, tile_h, budget)


# --------------------------------------------------------------------------
# Reference + test
# --------------------------------------------------------------------------
def _reference(x):
    """Pure-JAX reference of the PyTorch forward (replicate-padded neighbor diff)."""
    N, C, H, W = x.shape
    xp = jnp.pad(x, ((0, 0), (0, 0), (1, 1), (1, 1)), mode="edge")
    outs = []
    for (m, n) in DIRECTIONS:
        nb = xp[:, :, m:m + H, n:n + W]
        outs.append(jnp.abs(x - nb))
    return jnp.concatenate(outs, axis=1)


if __name__ == "__main__":
    key = jax.random.PRNGKey(0)
    x = jax.random.normal(key, (2, 3, 16, 16), dtype=jnp.float32)
    ref = _reference(x)

    # Auto path: narrow W -> lane-dense flattened kernel.
    out = jax.block_until_ready(neighbor_distancer(x))
    assert out.shape == (2, 24, 16, 16), out.shape
    assert jnp.allclose(out, ref, atol=1e-6), "flattened kernel mismatch vs reference"

    # Forced 2-D H-tiled path (exercises clamped halo rows on a (N, H//TH) grid).
    out_t = jax.block_until_ready(neighbor_distancer(x, flatten=False, tile_h=8))
    assert out_t.shape == (2, 24, 16, 16), out_t.shape
    assert jnp.allclose(out_t, ref, atol=1e-6), "tiled kernel mismatch vs reference"

    print("KERNEL_OK")
</pallas_src>

<mosaic_0001>
module attributes {stable_mosaic.version = 11 : i64} {
  func.func @_neighbor_kernel_flat(%arg0: i32, %arg1: memref<1x3x256xf32, #tpu.memory_space<vmem>>, %arg2: memref<1x24x256xf32, #tpu.memory_space<vmem>>) attributes {dimension_semantics = [#tpu.dimension_semantics<parallel>], iteration_bounds = array<i64: 2>, scalar_prefetch = 0 : i64, scratch_operands = 0 : i64, tpu.core_type = #tpu.core_type<tc>, window_params = [{transform_indices = @transform_0, window_bounds = array<i64: 1, 3, 256>}, {transform_indices = @transform_1, window_bounds = array<i64: 1, 24, 256>}]} {
    %c0 = arith.constant 0 : index
    %c0_0 = arith.constant 0 : index
    %c0_1 = arith.constant 0 : index
    %0 = vector.load %arg1[%c0, %c0_0, %c0_1] : memref<1x3x256xf32, #tpu.memory_space<vmem>>, vector<1x3x256xf32>
    %1 = vector.shape_cast %0 : vector<1x3x256xf32> to vector<3x256xf32>
    %2 = tpu.iota {dimensions = array<i32: 1>} : vector<1x256xi32>
    %c16_i32 = arith.constant 16 : i32
    %c0_i32 = arith.constant 0 : i32
    %3 = arith.cmpi eq, %c16_i32, %c0_i32 : i32
    %c1_i32 = arith.constant 1 : i32
    %4 = arith.select %3, %c1_i32, %c16_i32 : i32
    %5 = vector.broadcast %4 : i32 to vector<1x256xi32>
    %6 = arith.remsi %2, %5 : vector<1x256xi32>
    %c0_i32_2 = arith.constant 0 : i32
    %7 = vector.broadcast %c0_i32_2 : i32 to vector<1x256xi32>
    %8 = arith.cmpi ne, %6, %7 : vector<1x256xi32>
    %c0_i32_3 = arith.constant 0 : i32
    %9 = vector.broadcast %c0_i32_3 : i32 to vector<1x256xi32>
    %10 = arith.cmpi slt, %6, %9 : vector<1x256xi32>
    %c0_i32_4 = arith.constant 0 : i32
    %11 = arith.cmpi slt, %4, %c0_i32_4 : i32
    %12 = vector.broadcast %11 : i1 to vector<1x256xi1>
    %13 = vector.broadcast %12 : vector<1x256xi1> to vector<1x256xi1>
    %14 = arith.xori %10, %13 : vector<1x256xi1>
    %15 = arith.andi %14, %8 : vector<1x256xi1>
    %16 = vector.broadcast %4 : i32 to vector<1x256xi32>
    %17 = arith.addi %6, %16 : vector<1x256xi32>
    %18 = arith.select %15, %17, %6 : vector<1x256xi1>, vector<1x256xi32>
    %c16_i32_5 = arith.constant 16 : i32
    %19 = vector.broadcast %c16_i32_5 : i32 to vector<1x256xi32>
    %20 = arith.cmpi slt, %2, %19 : vector<1x256xi32>
    %c16_i32_6 = arith.constant 16 : i32
    %21 = tpu.dynamic_rotate %1 by %c16_i32_6 dim 1 : vector<3x256xf32>, i32 -> vector<3x256xf32>
    %22 = vector.shape_cast %20 : vector<1x256xi1> to vector<1x256xi1>
    %23 = vector.broadcast %22 : vector<1x256xi1> to vector<3x256xi1>
    %24 = arith.select %23, %1, %21 : vector<3x256xi1>, vector<3x256xf32>
    %c240_i32 = arith.constant 240 : i32
    %25 = vector.broadcast %c240_i32 : i32 to vector<1x256xi32>
    %26 = arith.cmpi sge, %2, %25 : vector<1x256xi32>
    %c240_i32_7 = arith.constant 240 : i32
    %27 = tpu.dynamic_rotate %1 by %c240_i32_7 dim 1 : vector<3x256xf32>, i32 -> vector<3x256xf32>
    %28 = vector.shape_cast %26 : vector<1x256xi1> to vector<1x256xi1>
    %29 = vector.broadcast %28 : vector<1x256xi1> to vector<3x256xi1>
    %30 = arith.select %29, %1, %27 : vector<3x256xi1>, vector<3x256xf32>
    %c0_i32_8 = arith.constant 0 : i32
    %31 = vector.broadcast %c0_i32_8 : i32 to vector<1x256xi32>
    %32 = arith.cmpi eq, %18, %31 : vector<1x256xi32>
    %c1_i32_9 = arith.constant 1 : i32
    %33 = tpu.dynamic_rotate %24 by %c1_i32_9 dim 1 : vector<3x256xf32>, i32 -> vector<3x256xf32>
    %34 = vector.shape_cast %32 : vector<1x256xi1> to vector<1x256xi1>
    %35 = vector.broadcast %34 : vector<1x256xi1> to vector<3x256xi1>
    %36 = arith.select %35, %24, %33 : vector<3x256xi1>, vector<3x256xf32>
    %37 = arith.subf %1, %36 : vector<3x256xf32>
    %38 = math.absf %37 : vector<3x256xf32>
    %c0_10 = arith.constant 0 : index
    %c0_11 = arith.constant 0 : index
    %c0_12 = arith.constant 0 : index
    %39 = vector.load %arg2[%c0_10, %c0_11, %c0_12] : memref<1x24x256xf32, #tpu.memory_space<vmem>>, vector<1x3x256xf32>
    %40 = vector.shape_cast %39 : vector<1x3x256xf32> to vector<3x256xf32>
    %41 = vector.shape_cast %38 : vector<3x256xf32> to vector<1x3x256xf32>
    tpu.vector_store %arg2[%c0_10, %c0_11, %c0_12], %41 {strides = array<i32>} : memref<1x24x256xf32, #tpu.memory_space<vmem>>, vector<1x3x256xf32>,
    %42 = arith.subf %1, %24 : vector<3x256xf32>
    %43 = math.absf %42 : vector<3x256xf32>
    %c0_13 = arith.constant 0 : index
    %c3 = arith.constant 3 : index
    %c0_14 = arith.constant 0 : index
    %44 = vector.load %arg2[%c0_13, %c3, %c0_14] : memref<1x24x256xf32, #tpu.memory_space<vmem>>, vector<1x3x256xf32>
    %45 = vector.shape_cast %44 : vector<1x3x256xf32> to vector<3x256xf32>
    %46 = vector.shape_cast %43 : vector<3x256xf32> to vector<1x3x256xf32>
    tpu.vector_store %arg2[%c0_13, %c3, %c0_14], %46 {strides = array<i32>} : memref<1x24x256xf32, #tpu.memory_space<vmem>>, vector<1x3x256xf32>,
    %c15_i32 = arith.constant 15 : i32
    %47 = vector.broadcast %c15_i32 : i32 to vector<1x256xi32>
    %48 = arith.cmpi eq, %18, %47 : vector<1x256xi32>
    %c255_i32 = arith.constant 255 : i32
    %49 = tpu.dynamic_rotate %24 by %c255_i32 dim 1 : vector<3x256xf32>, i32 -> vector<3x256xf32>
    %50 = vector.shape_cast %48 : vector<1x256xi1> to vector<1x256xi1>
    %51 = vector.broadcast %50 : vector<1x256xi1> to vector<3x256xi1>
    %52 = arith.select %51, %24, %49 : vector<3x256xi1>, vector<3x256xf32>
    %53 = arith.subf %1, %52 : vector<3x256xf32>
    %54 = math.absf %53 : vector<3x256xf32>
    %c0_15 = arith.constant 0 : index
    %c6 = arith.constant 6 : index
    %c0_16 = arith.constant 0 : index
    %55 = vector.load %arg2[%c0_15, %c6, %c0_16] : memref<1x24x256xf32, #tpu.memory_space<vmem>>, vector<1x3x256xf32>
    %56 = vector.shape_cast %55 : vector<1x3x256xf32> to vector<3x256xf32>
    %57 = vector.shape_cast %54 : vector<3x256xf32> to vector<1x3x256xf32>
    tpu.vector_store %arg2[%c0_15, %c6, %c0_16], %57 {strides = array<i32>} : memref<1x24x256xf32, #tpu.memory_space<vmem>>, vector<1x3x256xf32>,
    %c0_i32_17 = arith.constant 0 : i32
    %58 = vector.broadcast %c0_i32_17 : i32 to vector<1x256xi32>
    %59 = arith.cmpi eq, %18, %58 : vector<1x256xi32>
    %c1_i32_18 = arith.constant 1 : i32
    %60 = tpu.dynamic_rotate %1 by %c1_i32_18 dim 1 : vector<3x256xf32>, i32 -> vector<3x256xf32>
    %61 = vector.shape_cast %59 : vector<1x256xi1> to vector<1x256xi1>
    %62 = vector.broadcast %61 : vector<1x256xi1> to vector<3x256xi1>
    %63 = arith.select %62, %1, %60 : vector<3x256xi1>, vector<3x256xf32>
    %64 = arith.subf %1, %63 : vector<3x256xf32>
    %65 = math.absf %64 : vector<3x256xf32>
    %c0_19 = arith.constant 0 : index
    %c9 = arith.constant 9 : index
    %c0_20 = arith.constant 0 : index
    %66 = vector.load %arg2[%c0_19, %c9, %c0_20] : memref<1x24x256xf32, #tpu.memory_space<vmem>>, vector<1x3x256xf32>
    %67 = vector.shape_cast %66 : vector<1x3x256xf32> to vector<3x256xf32>
    %68 = vector.shape_cast %65 : vector<3x256xf32> to vector<1x3x256xf32>
    tpu.vector_store %arg2[%c0_19, %c9, %c0_20], %68 {strides = array<i32>} : memref<1x24x256xf32, #tpu.memory_space<vmem>>, vector<1x3x256xf32>,
    %c15_i32_21 = arith.constant 15 : i32
    %69 = vector.broadcast %c15_i32_21 : i32 to vector<1x256xi32>
    %70 = arith.cmpi eq, %18, %69 : vector<1x256xi32>
    %c255_i32_22 = arith.constant 255 : i32
    %71 = tpu.dynamic_rotate %1 by %c255_i32_22 dim 1 : vector<3x256xf32>, i32 -> vector<3x256xf32>
    %72 = vector.shape_cast %70 : vector<1x256xi1> to vector<1x256xi1>
    %73 = vector.broadcast %72 : vector<1x256xi1> to vector<3x256xi1>
    %74 = arith.select %73, %1, %71 : vector<3x256xi1>, vector<3x256xf32>
    %75 = arith.subf %1, %74 : vector<3x256xf32>
    %76 = math.absf %75 : vector<3x256xf32>
    %c0_23 = arith.constant 0 : index
    %c12 = arith.constant 12 : index
    %c0_24 = arith.constant 0 : index
    %77 = vector.load %arg2[%c0_23, %c12, %c0_24] : memref<1x24x256xf32, #tpu.memory_space<vmem>>, vector<1x3x256xf32>
    %78 = vector.shape_cast %77 : vector<1x3x256xf32> to vector<3x256xf32>
    %79 = vector.shape_cast %76 : vector<3x256xf32> to vector<1x3x256xf32>
    tpu.vector_store %arg2[%c0_23, %c12, %c0_24], %79 {strides = array<i32>} : memref<1x24x256xf32, #tpu.memory_space<vmem>>, vector<1x3x256xf32>,
    %c0_i32_25 = arith.constant 0 : i32
    %80 = vector.broadcast %c0_i32_25 : i32 to vector<1x256xi32>
    %81 = arith.cmpi eq, %18, %80 : vector<1x256xi32>
    %c1_i32_26 = arith.constant 1 : i32
    %82 = tpu.dynamic_rotate %30 by %c1_i32_26 dim 1 : vector<3x256xf32>, i32 -> vector<3x256xf32>
    %83 = vector.shape_cast %81 : vector<1x256xi1> to vector<1x256xi1>
    %84 = vector.broadcast %83 : vector<1x256xi1> to vector<3x256xi1>
    %85 = arith.select %84, %30, %82 : vector<3x256xi1>, vector<3x256xf32>
    %86 = arith.subf %1, %85 : vector<3x256xf32>
    %87 = math.absf %86 : vector<3x256xf32>
    %c0_27 = arith.constant 0 : index
    %c15 = arith.constant 15 : index
    %c0_28 = arith.constant 0 : index
    %88 = vector.load %arg2[%c0_27, %c15, %c0_28] : memref<1x24x256xf32, #tpu.memory_space<vmem>>, vector<1x3x256xf32>
    %89 = vector.shape_cast %88 : vector<1x3x256xf32> to vector<3x256xf32>
    %90 = vector.shape_cast %87 : vector<3x256xf32> to vector<1x3x256xf32>
    tpu.vector_store %arg2[%c0_27, %c15, %c0_28], %90 {strides = array<i32>} : memref<1x24x256xf32, #tpu.memory_space<vmem>>, vector<1x3x256xf32>,
    %91 = arith.subf %1, %30 : vector<3x256xf32>
    %92 = math.absf %91 : vector<3x256xf32>
    %c0_29 = arith.constant 0 : index
    %c18 = arith.constant 18 : index
    %c0_30 = arith.constant 0 : index
    %93 = vector.load %arg2[%c0_29, %c18, %c0_30] : memref<1x24x256xf32, #tpu.memory_space<vmem>>, vector<1x3x256xf32>
    %94 = vector.shape_cast %93 : vector<1x3x256xf32> to vector<3x256xf32>
    %95 = vector.shape_cast %92 : vector<3x256xf32> to vector<1x3x256xf32>
    tpu.vector_store %arg2[%c0_29, %c18, %c0_30], %95 {strides = array<i32>} : memref<1x24x256xf32, #tpu.memory_space<vmem>>, vector<1x3x256xf32>,
    %c15_i32_31 = arith.constant 15 : i32
    %96 = vector.broadcast %c15_i32_31 : i32 to vector<1x256xi32>
    %97 = arith.cmpi eq, %18, %96 : vector<1x256xi32>
    %c255_i32_32 = arith.constant 255 : i32
    %98 = tpu.dynamic_rotate %30 by %c255_i32_32 dim 1 : vector<3x256xf32>, i32 -> vector<3x256xf32>
    %99 = vector.shape_cast %97 : vector<1x256xi1> to vector<1x256xi1>
    %100 = vector.broadcast %99 : vector<1x256xi1> to vector<3x256xi1>
    %101 = arith.select %100, %30, %98 : vector<3x256xi1>, vector<3x256xf32>
    %102 = arith.subf %1, %101 : vector<3x256xf32>
    %103 = math.absf %102 : vector<3x256xf32>
    %c0_33 = arith.constant 0 : index
    %c21 = arith.constant 21 : index
    %c0_34 = arith.constant 0 : index
    %104 = vector.load %arg2[%c0_33, %c21, %c0_34] : memref<1x24x256xf32, #tpu.memory_space<vmem>>, vector<1x3x256xf32>
    %105 = vector.shape_cast %104 : vector<1x3x256xf32> to vector<3x256xf32>
    %106 = vector.shape_cast %103 : vector<3x256xf32> to vector<1x3x256xf32>
    tpu.vector_store %arg2[%c0_33, %c21, %c0_34], %106 {strides = array<i32>} : memref<1x24x256xf32, #tpu.memory_space<vmem>>, vector<1x3x256xf32>,
    return
  }
  func.func @transform_0(%arg0: i32) -> (i32, i32, i32) {
    %c0_i32 = arith.constant 0 : i32
    %c0_i32_0 = arith.constant 0 : i32
    %c0_i32_1 = arith.constant 0 : i32
    return %arg0, %c0_i32, %c0_i32_0 : i32, i32, i32
  }
  func.func @transform_1(%arg0: i32) -> (i32, i32, i32) {
    %c0_i32 = arith.constant 0 : i32
    %c0_i32_0 = arith.constant 0 : i32
    %c0_i32_1 = arith.constant 0 : i32
    return %arg0, %c0_i32, %c0_i32_0 : i32, i32, i32
  }
}

</mosaic_0001>

<bundles_post_ra>
// kernel: tpu_custom_call.1
= control target key start
LH: loop header
LB: loop body
LE: loop exit
PB: predicated region body
PF: predicated region fallthrough
CT: control target
= control target key end

     0   :  { %6 = vsyncpa [#allocation3], 0  ;;  %s833_s0 = inlined_call_operand.vmem [shape: f32[2,3,256], index: 0, kind: input, shape index: {}]   ;;  %s834_s1 = inlined_call_operand.hbm [shape: f32[2,24,256], index: 1, kind: output, shape index: {}]  }
   0x1   :  { %8 = vsyncpa [#allocation3 + $0x1], 0  ;;  %s560_s6 = smov 0   ;;  %s562_s7 = smov 0  }
   0x2   :  { %s564_s8 = smov 0   ;;  %s566_s9 = smov 0  }
   0x3 LB: > { %s581_s10 = sadd.s32 4294967295, %s542_s9   ;;  %s423_s11 = sadd.s32 4294967294, %s542_s9   ;;  %s542_s9 = sphi %s566_s9, %s848_s9   ;;  %s538_s8 = sphi %s564_s8, %s847_s8   ;;  %s534_s7 = sphi %s562_s7, %s846_s7   ;;  %s530_s6 = sphi %s560_s6, %s845_s6  }
   0x4   : > { %s585_s12 = sadd.s32 1, %s542_s9   ;;  %s47_s13 = sadd.s32 1, %s538_s8 }
   0x5   : > { %s44_s14 = ssub.s32 %s542_s9, %s585_s12  ;;  %p57_p0 = scmp.ne.s32.totalorder %s538_s8, %s534_s7 }
   0x6   : > { %p45_p1 = scmp.eq.s32.totalorder %s44_s14, 0  ;;  %p58_p2 = scmp.eq.s32.totalorder %s581_s10, 1 }
   0x7   : > { %p63_p3 = scmp.ne.s32.totalorder %s534_s7, %s530_s6  ;;  %p64_p4 = scmp.eq.s32.totalorder %s423_s11, 1 }
   0x8   : > { %s596_s15 = scalar_select %p45_p1, %s538_s8, %s47_s13  }
   0x9   : > { %p598_p5 = por %p58_p2, %p57_p0  ;;  %p602_p6 = por %p64_p4, %p63_p3 }
   0xa   : > { %p426_p7 = scmp.ge.s32.totalorder %s542_s9, 1  ;;  %p90_p8 = scmp.lt.s32.totalorder %s542_s9, 3 }
   0xc   : > { %p91_p9 = pnand %p426_p7, %p90_p8 }
   0xd   : > { %p110_p10 = scmp.lt.s32.totalorder (!%p91_p9), %s581_s10, 1  ;;  %s544_s23 = smov (!%p91_p9), 112   ;;  %v116_v2 = vlaneseq (!%p91_p9) }
   0xe   : > { %94 = sbr.rel (%p91_p9) target bundleno = 303 (0x12f), region = 24  ;;  %s545_s24 = smov (!%p91_p9), 16  }
   0xf   : > { %s546_s25 = smov (!%p91_p9), 1   ;;  %v629_v3 = vand.u32 (!%p91_p9), 127, %v116_v2  ;;  %s107_s26 = sand.u32 (!%p91_p9), 1, %s534_s7  }
  0x10   : > { %s547_s27 = smov (!%p91_p9), 127   ;;  %s433_s28 = smul.u32 (!%p91_p9), 48, %s107_s26 }
  0x11   : > { %v632_v4 = vadd.s32 (!%p91_p9), 128, %v629_v3  ;;  %vm166_vm0 = vcmp.lt.s32.totalorder (!%p91_p9), %v629_v3, 112  ;;  %vm143_vm1 = vcmp.lt.s32.totalorder (!%p91_p9), %v629_v3, 16  ;;  %v123_v7 = vand.u32 (!%p91_p9), 15, %v629_v3  ;;  %s434_s30 = smul.u32 (!%p91_p9), 768, %s581_s10  ;;  %s548_s13 = smov (!%p91_p9), [#allocation2]  }
  0x12   : > { %vm181_vm3 = vcmp.lt.s32.totalorder (!%p91_p9), %v629_v3, 1  ;;  %s690_s29 = scalar_lea.vmem (!%p91_p9), [#allocation2], %s433_s28  ;;  %vm221_vm6 = vcmp.lt.s32.totalorder (!%p91_p9), %v629_v3, 127  ;;  %s484_s14 = sshll.u32 (!%p91_p9), %s548_s13, 4  ;;  %s485_s14 = int_to_ptr.vmem [resolvable:$false] %s484_s14 }
  0x13   : > { %vm161_vm2 = vcmp.ge.s32.totalorder (!%p91_p9), %v632_v4, 240  ;;  %v130_v8 = vand.u32 (!%p91_p9), 15, %v632_v4  ;;  %vm659_vm4 = vcmp.eq.s32.totalorder (!%p91_p9), %v123_v7, 0  ;;  %vm707_vm7 = vcmp.eq.s32.totalorder (!%p91_p9), %v123_v7, 15  ;;  %s361_s2 = sshll.u32 (!%p91_p9), %s690_s29, 4  ;;  %s786_s5 = scalar_lea.hbm (!%p91_p9), %s834_s1, %s434_s30  ;;  %s778_s2 = int_to_ptr.vmem [resolvable:$true] %s361_s2 }
  0x14   : > { %s480_s11 = scalar_lea.vmem (!%p91_p9), %s778_s2, 768  ;;  %p487_p0 = scmp.lt.s32.totalorder (!%p91_p9), %s778_s2, %s485_s14 }
  0x15   : > { %s111_s18 = scalar_select %p110_p10, %s581_s10, 1  ;;  %vm663_vm5 = vcmp.eq.s32.totalorder %v130_v8, 0  ;;  %vm711_vm8 = vcmp.eq.s32.totalorder %v130_v8, 15 }
  0x16   : > { %s791_s10 = scalar_lea.sflag [#allocation3], %s107_s26  ;;  %p481_p11 = scmp.ne.s32.totalorder %s778_s2, %s480_s11 }
  0x17   : > { %s432_s19 = sshll.u32 %s111_s18, 3  ;;  %s486_s18 = scalar_lea.vmem %s485_s14, 1536 }
  0x18   : > { %s114_s22 = scalar_lea.vmem %s833_s0, %s432_s19  ;;  %p482_p12 = pnand %p481_p11, %p598_p5 }
  0x19   : > { %v613_v0 = vld [vmem:[%s114_s22] sm:$0x77]  ;;  %p488_p1 = scmp.lt.s32.totalorder %s486_s18, %s480_s11 }
  0x1a   : > { %162 = vrot.lane.b32.xlu1 %v613_v0, %s544_s23  ;;  %148 = vrot.lane.b32.xlu0 %v613_v0, %s545_s24  ;;  %v620_v1 = vcombine.high %v613_v0, %v613_v0  ;;  %p483_p13 = pneg %p482_p12 }
  0x1b   : > { %p489_p2 = por %p488_p1, %p487_p0 }
  0x1d   : > { %p490_p3 = pnand %p489_p2, %p483_p13 }
  0x1e   : > { %164 = vrot.lane.b32.xlu1 %v620_v1, %s544_s23  ;;  %150 = vrot.lane.b32.xlu0 %v620_v1, %s545_s24 }
  0x22   : > { %248 = vrot.lane.b32.xlu1 %v620_v1, %s546_s25  ;;  %246 = vrot.lane.b32.xlu0 %v613_v0, %s546_s25 }
  0x8c   : > { %v163_v5 = vpop.permute.xlu1 %162  ;;  %v149_v6 = vpop.permute.xlu0 %148 }
  0x90   : > { %v165_v9 = vpop.permute.xlu1 %164  ;;  %v151_v10 = vpop.permute.xlu0 %150 }
  0x91   : > { %v640_v11 = vsel %vm166_vm0, %v163_v5, %v165_v9  ;;  %v168_v12 = vsel %vm166_vm0, %v165_v9, %v163_v5  ;;  %v642_v13 = vsel %vm143_vm1, %v149_v6, %v151_v10  ;;  %v153_v14 = vsel %vm143_vm1, %v151_v10, %v149_v6 }
  0x92   : > { %v645_v15 = vsel %vm161_vm2, %v620_v1, %v168_v12  ;;  %v648_v16 = vsel %vm143_vm1, %v613_v0, %v153_v14  ;;  %287 = vrot.lane.b32.xlu0 %v640_v11, %s546_s25  ;;  %219 = vrot.lane.b32.xlu1 %v642_v13, %s547_s27 }
  0x93   : > { %v313_v17 = vcombine.low %v640_v11, %v645_v15  ;;  %v203_v18 = vcombine.low %v648_v16, %v642_v13 }
  0x94   : > { %v249_v21 = vpop.permute.xlu1 %248  ;;  %v247_v22 = vpop.permute.xlu0 %246 }
  0x95   : > { %v315_v23 = vsub.f32 %v613_v0, %v313_v17  ;;  %v205_v24 = vsub.f32 %v613_v0, %v203_v18  ;;  %v250_v25 = vsel %vm181_vm3, %v247_v22, %v249_v21  ;;  %v251_v26 = vsel %vm181_vm3, %v249_v21, %v247_v22 }
  0x96   : > { %325 = vrot.lane.b32.xlu0 %v640_v11, %s547_s27  ;;  %179 = vrot.lane.b32.xlu1 %v642_v13, %s546_s25  ;;  %v252_v27 = vsel %vm659_vm4, %v613_v0, %v251_v26  ;;  %v253_v28 = vsel %vm663_vm5, %v620_v1, %v250_v25 }
  0x97   : > { %v316_v29 = vand.u32 2147483647, %v315_v23  ;;  %v206_v30 = vand.u32 2147483647, %v205_v24  ;;  %v256_v31 = vcombine.low %v252_v27, %v253_v28 }
  0x99   : > { %v318_v32 = vcombine.high %v316_v29, %v316_v29  ;;  %v319_v33 = vrot.slane %v316_v29, 6  ;;  %v208_v34 = vcombine.high %v206_v30, %v206_v30  ;;  %v209_v35 = vrot.slane %v206_v30, 5 }
  0x9a   : > { %217 = vrot.lane.b32.xlu0 %v648_v16, %s547_s27  ;;  %289 = vrot.lane.b32.xlu1 %v645_v15, %s546_s25  ;;  %v258_v36 = vsub.f32 %v613_v0, %v256_v31 }
  0x9b   : > { %v320_v37 = vrot.slane %v318_v32, 6  ;;  %323 = vst [vmem:[%s690_s29 + $0x20] sm:$0x1c] %v319_v33  ;;  %v210_v38 = vrot.slane %v208_v34, 5  ;;  %213 = vst [vmem:[%s690_s29] sm:$0x38] %v209_v35 }
  0x9c   : > { %v259_v39 = vand.u32 2147483647, %v258_v36 }
  0x9d   : > { %324 = vst [vmem:[%s690_s29 + $0x28] sm:$0x1c] %v320_v37  ;;  %214 = vst [vmem:[%s690_s29 + $0x8] sm:$0x38] %v210_v38 }
  0x9e   : > { %177 = vrot.lane.b32.xlu0 %v648_v16, %s546_s25  ;;  %327 = vrot.lane.b32.xlu1 %v645_v15, %s547_s27  ;;  %v261_v40 = vcombine.high %v259_v39, %v259_v39  ;;  %v262_v41 = vrot.slane %v259_v39, 7 }
  0xa0   : > { %v263_v42 = vrot.slane %v261_v40, 7  ;;  %266 = vst [vmem:[%s690_s29 + $0x10] sm:$0xe] %v262_v41 }
  0xa2   : > { %268 = vrot.lane.b32.xlu0 %v613_v0, %s547_s27  ;;  %270 = vrot.lane.b32.xlu1 %v620_v1, %s547_s27  ;;  %267 = vst [vmem:[%s690_s29 + $0x18] sm:$0xe] %v263_v42 }
 0x104   : > { %v220_v43 = vpop.permute.xlu1 %219  ;;  %v288_v44 = vpop.permute.xlu0 %287 }
 0x108   : > { %v180_v45 = vpop.permute.xlu1 %179  ;;  %v326_v46 = vpop.permute.xlu0 %325 }
 0x10c   : > { %v290_v49 = vpop.permute.xlu1 %289  ;;  %v218_v50 = vpop.permute.xlu0 %217 }
 0x10d   : > { %v291_v51 = vsel %vm181_vm3, %v288_v44, %v290_v49  ;;  %v292_v52 = vsel %vm181_vm3, %v290_v49, %v288_v44  ;;  %v222_v53 = vsel %vm221_vm6, %v218_v50, %v220_v43  ;;  %v223_v54 = vsel %vm221_vm6, %v220_v43, %v218_v50 }
 0x10e   : > { %v293_v55 = vsel %vm659_vm4, %v640_v11, %v292_v52  ;;  %v294_v56 = vsel %vm663_vm5, %v645_v15, %v291_v51  ;;  %v228_v57 = vsel %vm707_vm7, %v648_v16, %v222_v53  ;;  %v229_v58 = vsel %vm711_vm8, %v642_v13, %v223_v54 }
 0x10f   : > { %v297_v59 = vcombine.low %v293_v55, %v294_v56  ;;  %v232_v60 = vcombine.low %v228_v57, %v229_v58 }
 0x110   : > { %v328_v61 = vpop.permute.xlu1 %327  ;;  %v178_v62 = vpop.permute.xlu0 %177 }
 0x111   : > { %v299_v63 = vsub.f32 %v613_v0, %v297_v59  ;;  %v234_v2 = vsub.f32 %v613_v0, %v232_v60  ;;  %v329_v4 = vsel %vm221_vm6, %v326_v46, %v328_v61  ;;  %v330_v5 = vsel %vm221_vm6, %v328_v61, %v326_v46 }
 0x112   : > { %v331_v6 = vsel %vm707_vm7, %v640_v11, %v329_v4  ;;  %v332_v7 = vsel %vm711_vm8, %v645_v15, %v330_v5  ;;  %v182_v8 = vsel %vm181_vm3, %v178_v62, %v180_v45  ;;  %v183_v9 = vsel %vm181_vm3, %v180_v45, %v178_v62 }
 0x113   : > { %v300_v10 = vand.u32 2147483647, %v299_v63  ;;  %v235_v12 = vand.u32 2147483647, %v234_v2  ;;  %v335_v14 = vcombine.low %v331_v6, %v332_v7  ;;  %v188_v17 = vsel %vm659_vm4, %v648_v16, %v183_v9 }
 0x114   : > { %v189_v11 = vsel %vm663_vm5, %v642_v13, %v182_v8  ;;  %v271_v15 = vpop.permute.xlu1 %270  ;;  %v269_v18 = vpop.permute.xlu0 %268 }
 0x115   : > { %v302_v21 = vcombine.high %v300_v10, %v300_v10  ;;  %v303_v22 = vrot.slane %v300_v10, 1  ;;  %v237_v23 = vcombine.high %v235_v12, %v235_v12  ;;  %v238_v24 = vrot.slane %v235_v12, 2 }
 0x116   : > { %v337_v25 = vsub.f32 %v613_v0, %v335_v14  ;;  %v192_v26 = vcombine.low %v188_v17, %v189_v11  ;;  %v272_v19 = vsel %vm221_vm6, %v269_v18, %v271_v15  ;;  %v273_v16 = vsel %vm221_vm6, %v271_v15, %v269_v18 }
 0x117   : > { %v304_v20 = vrot.slane %v302_v21, 1  ;;  %307 = vst [vmem:[%s690_s29 + $0x20] ss:$-12 sps:$4 sm:$0x83] %v303_v22   ;;  %v239_v13 = vrot.slane %v237_v23, 2  ;;  %v274_v27 = vsel %vm707_vm7, %v613_v0, %v272_v19  ;;  %v275_v28 = vsel %vm711_vm8, %v620_v1, %v273_v16 }
 0x118   : > { %242 = vst [vmem:[%s690_s29 + $0x10] ss:$-12 sps:$4 sm:$0xc1] %v238_v24   ;;  %v338_v29 = vand.u32 2147483647, %v337_v25  ;;  %v194_v3 = vsub.f32 %v613_v0, %v192_v26  ;;  %v278_v30 = vcombine.low %v274_v27, %v275_v28 }
 0x119   : > { %308 = vst [vmem:[%s690_s29 + $0x28] ss:$-12 sps:$4 sm:$0x83] %v304_v20   ;;  %243 = vst [vmem:[%s690_s29 + $0x18] ss:$-12 sps:$4 sm:$0xc1] %v239_v13  }
 0x11a   : > { %v340_v31 = vcombine.high %v338_v29, %v338_v29  ;;  %v341_v32 = vrot.slane %v338_v29, 3  ;;  %v195_v33 = vand.u32 2147483647, %v194_v3  ;;  %v280_v34 = vsub.f32 %v613_v0, %v278_v30 }
 0x11c   : > { %v342_v1 = vrot.slane %v340_v31, 3  ;;  %345 = vst [vmem:[%s690_s29 + $0x20] sm:$0xe0] %v341_v32  ;;  %v197_v35 = vcombine.high %v195_v33, %v195_v33  ;;  %199 = vst [vmem:[%s690_s29] sm:$0x7] %v195_v33  ;;  %v281_v36 = vand.u32 2147483647, %v280_v34 }
 0x11e   : > { %346 = vst [vmem:[%s690_s29 + $0x28] sm:$0xe0] %v342_v1  ;;  %200 = vst [vmem:[%s690_s29 + $0x8] sm:$0x7] %v197_v35  ;;  %v283_v37 = vcombine.low %v281_v36, %v281_v36 }
 0x11f   : > { %286 = vst [vmem:[%s690_s29 + $0x18] sm:$0x70] %v281_v36 }
 0x120   : > { %285 = vst [vmem:[%s690_s29 + $0x10] sm:$0x70] %v283_v37 }
 0x121   : > { %493 = shalt.err (!%p490_p3)
}
 0x122   : > { %s494_s19 = scalar_lea.hbm %s786_s5, 768  ;;  %s498_s22 = scalar_lea.hbm %s834_s1, 1536 }
 0x123   : > { %p495_p4 = scmp.ne.s32.totalorder %s786_s5, %s494_s19  ;;  %p499_p9 = scmp.lt.u32.totalorder %s786_s5, %s834_s1 }
 0x124   : > { %p500_p10 = scmp.lt.u32.totalorder %s498_s22, %s494_s19  ;;  %p502_p12 = scmp.lt.u32.totalorder %s494_s19, %s786_s5 }
 0x125   : > { %p496_p7 = pnand %p495_p4, %p598_p5 }
 0x126   : > { %p501_p11 = por %p500_p10, %p499_p9 }
 0x127   : > { %p497_p8 = pneg %p496_p7 }
 0x128   : > { %p503_p13 = por %p502_p12, %p501_p11 }
 0x12a   : > { %p504_p0 = pnand %p503_p13, %p497_p8 }
 0x12c   : > { %507 = shalt.err (!%p504_p0)
}
 0x12d   : > { %s549_s26 = smov 256  }
 0x12e   : > { %435 = dma.vmem_to_hbm [thread:$0]  (%p598_p5), %s778_s2, 768, %s786_s5, %s791_s10, %s549_s26, %s549_s26, %s545_s24  }
 0x12f PF: > { %p441_p1 = scmp.ge.s32.totalorder %s542_s9, 2  ;;  %s376_s27 = sand.u32 1, %s530_s6  }
 0x130   : > { %s377_s28 = scalar_lea.sflag [#allocation3], %s376_s27 }
 0x131   : > { %p438_p2 = pnand %p441_p1, %p602_p6 }
 0x133   : > { %525 = dma.done.wait (!%p438_p2), %s377_s28, 768  }
 0x134   : > { %527 = vsyncadd (!%p438_p2), %s377_s28, 4294966528  ;;  %p11_p3 = scmp.ge.s32.totalorder %s585_s12, 4   ;;  %s845_s6 = smov %s534_s7 }
 0x135   : > { %s846_s7 = smov %s538_s8  ;;  %s847_s8 = smov %s596_s15 }
 0x136   : > { %s848_s9 = smov %s585_s12  ;;  %13 = sbr.rel (!%p11_p3) target bundleno = 3 (0x3), region = 59 }
 0x13d   :  { %382 = vsyncpa [#allocation3], 1 }
 0x13e   :  { %384 = vsyncpa [#allocation3 + $0x1], 1 }

</bundles_post_ra>
